<compile_context>
chip_gen: v7x
topology: tpu7x:2x2x1
jax: 0.10.0
libtpu: 0.0.40
codegen_flags: <defaults>
</compile_context>

<pallas_src>
import jax
import jax.numpy as jnp
from jax.experimental import pallas as pl
from jax.experimental.pallas import tpu as pltpu


def _round_up(x, m):
    return ((x + m - 1) // m) * m


def _vmem_capacity_bytes():
    try:
        return int(pltpu.get_tpu_info().vmem_capacity_bytes)
    except Exception:
        return 64 * 1024 * 1024  # conservative (v7x per-TC) fallback


def _vmem_needed(tb, d, hp, o):
    """Rough VMEM bytes for one grid step (double-buffered streams + resident weights)."""
    inputs = 2 * 2 * tb * d * 2                     # two bf16 input streams, double-buffered
    output = 2 * tb * o * 4                         # f32 output stream, double-buffered
    weights = 2 * (4 * d * hp * 2 + hp * 4          # w1 bf16 + b1 f32 (x2: Pallas
                   + hp * o * 2 + o * 4)            # double-buffers even const-index specs)
    temps = 2 * tb * (4 * d * 2 + hp * 4 + hp * 2 + o * 4)   # concat/acc/h/out headroom
    return inputs + output + weights + temps


def _pick_tb(batch, d, hp, o, target, budget):
    """Divisor-aware batch tile: big enough to amortize ~0.35us/step, fits VMEM,
    avoids gross tail padding, and keeps >=2 grid steps (v7x megacore) when possible."""
    n_tiles = max(1, -(-batch // max(target, 8)))
    if batch >= 16:
        n_tiles = max(n_tiles, 2)
    tb = _round_up(-(-batch // n_tiles), 8)
    while tb > 8 and _vmem_needed(tb, d, hp, o) > budget:
        tb = _round_up(max(tb // 2, 8), 8)
    return tb


def _make_kernel(use_split):
    def kernel(a_ref, b_ref, w1_ref, b1_ref, w2_ref, b2_ref, out_ref):
        a = a_ref[...]                         # (TB, D) bf16
        b = b_ref[...]                         # (TB, D) bf16
        diff = jnp.abs(a - b)
        prod = a * b

        if use_split:
            # D % 128 == 0: four aligned K=D contractions against static,
            # tile-aligned row-slices of the resident w1 (zero-cost ref views).
            d = a.shape[-1]
            acc = jnp.dot(a, w1_ref[0:d, :], preferred_element_type=jnp.float32)
            for i, f in enumerate((b, diff, prod), start=1):
                acc += jnp.dot(f, w1_ref[i * d:(i + 1) * d, :],
                               preferred_element_type=jnp.float32)
        else:
            # Small D: one lane-dense (TB, 4D) tile, single full-depth K=4D matmul.
            feats = jnp.concatenate([a, b, diff, prod], axis=-1)
            acc = jnp.dot(feats, w1_ref[...], preferred_element_type=jnp.float32)

        # fc0 bias + ReLU in f32.
        h = jnp.maximum(acc + b1_ref[...], 0.0)

        # final fc (no activation): bf16 operands, f32 accumulation, unpadded N=O.
        out = jnp.dot(h.astype(jnp.bfloat16), w2_ref[...],
                      preferred_element_type=jnp.float32) + b2_ref[...]
        out_ref[...] = out.astype(out_ref.dtype)

    return kernel


def combine_siamese_head(first, second, w1, b1, w2, b2, *, batch_tile=1024):
    """CombineSiameseHead('concat', fc_dims=[H, O]) forward.

    first/second: (B, D).
    w1: (4D, H), b1: (H,), w2: (H, O), b2: (O,)  — nn.Linear weights stored
    pre-transposed as (in, out) so the kernel computes x @ W + b.
    """
    B, D = first.shape
    H = w1.shape[1]
    O = w2.shape[1]
    assert w1.shape[0] == 4 * D and w2.shape[0] == H

    # ---- one-time parameter prep (layout plumbing, not per-step compute) ----
    # Hidden dim padded to a lane multiple (lane-dense intermediate matmuls);
    # output dim kept unpadded so HBM writeback is exactly B*O*4 bytes.
    Hp = _round_up(H, 128)
    w1p = jnp.pad(w1, ((0, 0), (0, Hp - H))).astype(jnp.bfloat16)
    b1p = jnp.pad(jnp.reshape(b1, (1, H)), ((0, 0), (0, Hp - H))).astype(jnp.float32)
    w2p = jnp.pad(w2, ((0, Hp - H), (0, 0))).astype(jnp.bfloat16)
    b2p = jnp.reshape(b2, (1, O)).astype(jnp.float32)

    # bf16 input streams: halves the dominant per-step HBM traffic; the matmul
    # operands are bf16 anyway, and |a-b|, a*b are computed on the bf16 values.
    a16 = first.astype(jnp.bfloat16)
    b16 = second.astype(jnp.bfloat16)

    # ---- batch tiling, sized against the per-generation VMEM budget ---------
    capacity = _vmem_capacity_bytes()
    budget = max(capacity - (8 << 20), 16 << 20)
    TB = _pick_tb(B, D, Hp, O, batch_tile, budget)
    n_tiles = -(-B // TB)
    Bp = n_tiles * TB
    if Bp != B:
        a16 = jnp.pad(a16, ((0, Bp - B), (0, 0)))
        b16 = jnp.pad(b16, ((0, Bp - B), (0, 0)))

    vmem_needed = _vmem_needed(TB, D, Hp, O)
    vmem_limit = int(min(max(vmem_needed * 5 // 4, 32 << 20), budget))

    use_split = (D % 128 == 0)
    kernel = _make_kernel(use_split)

    cost = pl.CostEstimate(
        flops=2 * Bp * (4 * D) * Hp + 2 * Bp * Hp * O,
        transcendentals=0,
        bytes_accessed=(2 * Bp * D * 2 + Bp * O * 4
                        + (4 * D * Hp + Hp * O) * 2 + (Hp + O) * 4),
    )

    out_padded = pl.pallas_call(
        kernel,
        out_shape=jax.ShapeDtypeStruct((Bp, O), jnp.float32),
        grid=(n_tiles,),
        in_specs=[
            pl.BlockSpec((TB, D), lambda i: (i, 0)),
            pl.BlockSpec((TB, D), lambda i: (i, 0)),
            # Constant block index -> weights/biases stay VMEM-resident and are
            # not re-DMAed across batch tiles.
            pl.BlockSpec((4 * D, Hp), lambda i: (0, 0)),
            pl.BlockSpec((1, Hp), lambda i: (0, 0)),
            pl.BlockSpec((Hp, O), lambda i: (0, 0)),
            pl.BlockSpec((1, O), lambda i: (0, 0)),
        ],
        # Unpadded (TB, O) writeback: last dim equals the full array dim, so the
        # (8,128) rule is satisfied; accepts a masked store but cuts HBM bytes 8x
        # for small O.
        out_specs=pl.BlockSpec((TB, O), lambda i: (i, 0)),
        compiler_params=pltpu.CompilerParams(
            dimension_semantics=("parallel",),   # independent batch tiles (2 TCs on v7x)
            vmem_limit_bytes=vmem_limit,
        ),
        cost_estimate=cost,
    )(a16, b16, w1p, b1p, w2p, b2p)

    return out_padded[:B]


def reference_f32(first, second, w1, b1, w2, b2):
    combined = jnp.concatenate(
        [first, second, jnp.abs(first - second), first * second], axis=-1)
    h = jnp.maximum(combined @ w1 + jnp.reshape(b1, (1, -1)), 0.0)
    return h @ w2 + jnp.reshape(b2, (1, -1))


def reference_mixed(first, second, w1, b1, w2, b2):
    """Mirrors the kernel's bf16-operand / f32-accumulate arithmetic."""
    a = first.astype(jnp.bfloat16)
    b = second.astype(jnp.bfloat16)
    combined = jnp.concatenate([a, b, jnp.abs(a - b), a * b], axis=-1)
    h = jnp.dot(combined, w1.astype(jnp.bfloat16),
                preferred_element_type=jnp.float32) + jnp.reshape(b1, (1, -1))
    h = jnp.maximum(h, 0.0)
    return jnp.dot(h.astype(jnp.bfloat16), w2.astype(jnp.bfloat16),
                   preferred_element_type=jnp.float32) + jnp.reshape(b2, (1, -1))


if __name__ == "__main__":
    # Small shapes consistent with the module:
    #   input_dim = 32, fc_dims = [64, 16], batch = 8
    B, D = 8, 32
    fc_dims = (64, 16)
    combined_dim = 4 * D  # ConcatCompare combined features size

    key = jax.random.PRNGKey(0)
    k_a, k_b, k_w1, k_b1, k_w2, k_b2 = jax.random.split(key, 6)

    first = jax.random.normal(k_a, (B, D), dtype=jnp.float32)
    second = jax.random.normal(k_b, (B, D), dtype=jnp.float32)

    # nn.Linear(in, out): weight (out, in), bias (out,). Stored here pre-transposed
    # as (in, out) so the kernel does x @ W + b.
    w1 = jax.random.normal(k_w1, (combined_dim, fc_dims[0]), dtype=jnp.float32) * 0.05
    b1 = jax.random.normal(k_b1, (fc_dims[0],), dtype=jnp.float32) * 0.05
    w2 = jax.random.normal(k_w2, (fc_dims[0], fc_dims[1]), dtype=jnp.float32) * 0.05
    b2 = jax.random.normal(k_b2, (fc_dims[1],), dtype=jnp.float32) * 0.05

    out = combine_siamese_head(first, second, w1, b1, w2, b2)
    out = jax.block_until_ready(out)
    assert out.shape == (B, fc_dims[1]), out.shape

    # Tight check against a reference that mirrors the bf16 arithmetic.
    ref_mixed = reference_mixed(first, second, w1, b1, w2, b2)
    assert jnp.allclose(out, ref_mixed, atol=5e-3, rtol=5e-3), \
        "mismatch vs bf16-matmul reference"

    # Looser semantic check against the pure-f32 PyTorch-equivalent math.
    ref_f32 = reference_f32(first, second, w1, b1, w2, b2)
    assert jnp.allclose(out, ref_f32, atol=6e-2, rtol=6e-2), \
        "mismatch vs f32 reference"

    print("KERNEL_OK")
</pallas_src>

<mosaic_0001>
module attributes {stable_mosaic.version = 11 : i64} {
  func.func @kernel(%arg0: i32, %arg1: memref<8x32xbf16, #tpu.memory_space<vmem>>, %arg2: memref<8x32xbf16, #tpu.memory_space<vmem>>, %arg3: memref<128x128xbf16, #tpu.memory_space<vmem>>, %arg4: memref<1x128xf32, #tpu.memory_space<vmem>>, %arg5: memref<128x16xbf16, #tpu.memory_space<vmem>>, %arg6: memref<1x16xf32, #tpu.memory_space<vmem>>, %arg7: memref<8x16xf32, #tpu.memory_space<vmem>>) attributes {dimension_semantics = [#tpu.dimension_semantics<parallel>], iteration_bounds = array<i64: 1>, scalar_prefetch = 0 : i64, scratch_operands = 0 : i64, tpu.core_type = #tpu.core_type<tc>, window_params = [{transform_indices = @transform_0, window_bounds = array<i64: 8, 32>}, {transform_indices = @transform_1, window_bounds = array<i64: 8, 32>}, {pipeline_mode = #tpu.pipeline_mode<synchronous>, transform_indices = @transform_2, window_bounds = array<i64: 128, 128>}, {pipeline_mode = #tpu.pipeline_mode<synchronous>, transform_indices = @transform_3, window_bounds = array<i64: 1, 128>}, {pipeline_mode = #tpu.pipeline_mode<synchronous>, transform_indices = @transform_4, window_bounds = array<i64: 128, 16>}, {pipeline_mode = #tpu.pipeline_mode<synchronous>, transform_indices = @transform_5, window_bounds = array<i64: 1, 16>}, {transform_indices = @transform_6, window_bounds = array<i64: 8, 16>}]} {
    %c0 = arith.constant 0 : index
    %c0_0 = arith.constant 0 : index
    %0 = vector.load %arg1[%c0, %c0_0] : memref<8x32xbf16, #tpu.memory_space<vmem>>, vector<8x32xbf16>
    %c0_1 = arith.constant 0 : index
    %c0_2 = arith.constant 0 : index
    %1 = vector.load %arg2[%c0_1, %c0_2] : memref<8x32xbf16, #tpu.memory_space<vmem>>, vector<8x32xbf16>
    %2 = arith.subf %0, %1 : vector<8x32xbf16>
    %3 = math.absf %2 : vector<8x32xbf16>
    %4 = arith.mulf %0, %1 : vector<8x32xbf16>
    %5 = tpu.concatenate %0, %1, %3, %4 in 1 : vector<8x32xbf16>, vector<8x32xbf16>, vector<8x32xbf16>, vector<8x32xbf16> -> vector<8x128xbf16>
    %c0_3 = arith.constant 0 : index
    %c0_4 = arith.constant 0 : index
    %6 = vector.load %arg3[%c0_3, %c0_4] : memref<128x128xbf16, #tpu.memory_space<vmem>>, vector<128x128xbf16>
    %cst = arith.constant dense<0.000000e+00> : vector<8x128xf32>
    %7 = tpu.matmul %5, %6, %cst {dimension_numbers = #tpu.dot_dimension_numbers<[1], [0], [0], [1], [0, 0, 1, 1], [], []>} : vector<8x128xbf16>, vector<128x128xbf16>, vector<8x128xf32> -> vector<8x128xf32>
    %c0_5 = arith.constant 0 : index
    %c0_6 = arith.constant 0 : index
    %8 = vector.load %arg4[%c0_5, %c0_6] : memref<1x128xf32, #tpu.memory_space<vmem>>, vector<1x128xf32>
    %9 = vector.broadcast %8 : vector<1x128xf32> to vector<8x128xf32>
    %10 = arith.addf %7, %9 : vector<8x128xf32>
    %cst_7 = arith.constant 0.000000e+00 : f32
    %11 = vector.broadcast %cst_7 : f32 to vector<8x128xf32>
    %12 = arith.maximumf %10, %11 : vector<8x128xf32>
    %13 = arith.truncf %12 : vector<8x128xf32> to vector<8x128xbf16>
    %c0_8 = arith.constant 0 : index
    %c0_9 = arith.constant 0 : index
    %14 = vector.load %arg5[%c0_8, %c0_9] : memref<128x16xbf16, #tpu.memory_space<vmem>>, vector<128x16xbf16>
    %cst_10 = arith.constant dense<0.000000e+00> : vector<8x16xf32>
    %15 = tpu.matmul %13, %14, %cst_10 {dimension_numbers = #tpu.dot_dimension_numbers<[1], [0], [0], [1], [0, 0, 1, 1], [], []>} : vector<8x128xbf16>, vector<128x16xbf16>, vector<8x16xf32> -> vector<8x16xf32>
    %c0_11 = arith.constant 0 : index
    %c0_12 = arith.constant 0 : index
    %16 = vector.load %arg6[%c0_11, %c0_12] : memref<1x16xf32, #tpu.memory_space<vmem>>, vector<1x16xf32>
    %17 = vector.broadcast %16 : vector<1x16xf32> to vector<8x16xf32>
    %18 = arith.addf %15, %17 : vector<8x16xf32>
    %c0_13 = arith.constant 0 : index
    %c0_14 = arith.constant 0 : index
    %19 = vector.load %arg7[%c0_13, %c0_14] : memref<8x16xf32, #tpu.memory_space<vmem>>, vector<8x16xf32>
    tpu.vector_store %arg7[%c0_13, %c0_14], %18 {strides = array<i32>} : memref<8x16xf32, #tpu.memory_space<vmem>>, vector<8x16xf32>,
    return
  }
  func.func @transform_0(%arg0: i32) -> (i32, i32) {
    %c0_i32 = arith.constant 0 : i32
    %c0_i32_0 = arith.constant 0 : i32
    return %arg0, %c0_i32 : i32, i32
  }
  func.func @transform_1(%arg0: i32) -> (i32, i32) {
    %c0_i32 = arith.constant 0 : i32
    %c0_i32_0 = arith.constant 0 : i32
    return %arg0, %c0_i32 : i32, i32
  }
  func.func @transform_2(%arg0: i32) -> (i32, i32) {
    %c0_i32 = arith.constant 0 : i32
    %c0_i32_0 = arith.constant 0 : i32
    %c0_i32_1 = arith.constant 0 : i32
    return %c0_i32, %c0_i32_0 : i32, i32
  }
  func.func @transform_3(%arg0: i32) -> (i32, i32) {
    %c0_i32 = arith.constant 0 : i32
    %c0_i32_0 = arith.constant 0 : i32
    %c0_i32_1 = arith.constant 0 : i32
    return %c0_i32, %c0_i32_0 : i32, i32
  }
  func.func @transform_4(%arg0: i32) -> (i32, i32) {
    %c0_i32 = arith.constant 0 : i32
    %c0_i32_0 = arith.constant 0 : i32
    %c0_i32_1 = arith.constant 0 : i32
    return %c0_i32, %c0_i32_0 : i32, i32
  }
  func.func @transform_5(%arg0: i32) -> (i32, i32) {
    %c0_i32 = arith.constant 0 : i32
    %c0_i32_0 = arith.constant 0 : i32
    %c0_i32_1 = arith.constant 0 : i32
    return %c0_i32, %c0_i32_0 : i32, i32
  }
  func.func @transform_6(%arg0: i32) -> (i32, i32) {
    %c0_i32 = arith.constant 0 : i32
    %c0_i32_0 = arith.constant 0 : i32
    return %arg0, %c0_i32 : i32, i32
  }
}

</mosaic_0001>

<bundles_post_ra>
// kernel: tpu_custom_call.1
= control target key start
LH: loop header
LB: loop body
LE: loop exit
PB: predicated region body
PF: predicated region fallthrough
CT: control target
= control target key end

     0   :  { %v422_v5 = vmov 0.0   ;;  %s424_s28 = smov 96   ;;  %s425_s29 = smov 64   ;;  %vm426_vm0 = vmmov 0   ;;  %s558_s0 = inlined_call_operand.vmem [shape: bf16[8,32], index: 0, kind: input, shape index: {}]   ;;  %s559_s1 = inlined_call_operand.vmem [shape: bf16[8,32], index: 1, kind: input, shape index: {}]   ;;  %s560_s2 = inlined_call_operand.vmem [shape: bf16[128,128], index: 2, kind: input, shape index: {}]   ;;  %s561_s3 = inlined_call_operand.vmem [shape: f32[1,128], index: 3, kind: input, shape index: {}]   ;;  %s562_s4 = inlined_call_operand.vmem [shape: bf16[128,16], index: 4, kind: input, shape index: {}]   ;;  %s563_s5 = inlined_call_operand.vmem [shape: f32[1,16], index: 5, kind: input, shape index: {}]   ;;  %s564_s6 = inlined_call_operand.hbm [shape: f32[8,16], index: 6, kind: output, shape index: {}]  }
   0x1   :  { %v26_v0 = vld [vmem:[%s559_s1] sm:$0xf]  ;;  %335 = vmatprep.subr.bf16.mxu0 %v422_v5  ;;  %355 = vmatprep.subr.bf16.mxu1 %v422_v5  ;;  %s423_s1 = smov 32   ;;  %v383_v9 = vld [vmem:[%s560_s2 + $0x8] sm:$0xff]   ;;  %v384_v11 = vld [vmem:[%s560_s2 + $0x10] sm:$0xff]  }
   0x2   :  { %v469_v1 = vld [vmem:[%s558_s0] sm:$0xf]  ;;  %v296_v2 = vcombine.low %v26_v0, %v26_v0  ;;  %351 = vmatprep.mubr.msk.bf16.mxu0 %vm426_vm0, %v422_v5  ;;  %371 = vmatprep.mubr.msk.bf16.mxu1 %vm426_vm0, %v422_v5  ;;  %v385_v13 = vld [vmem:[%s560_s2 + $0x18] sm:$0xff]   ;;  %v391_v14 = vld [vmem:[%s562_s4 + $0x8] sm:$0xff]  }
   0x3   :  { %v27_v3 = vsub.bf16 %v469_v1, %v26_v0  ;;  %v29_v4 = vmul.bf16 %v26_v0, %v469_v1  ;;  %v382_v6 = vld [vmem:[%s560_s2] sm:$0xff]   ;;  %v392_v16 = vld [vmem:[%s562_s4 + $0x10] sm:$0xff]  }
   0x4   :  { %33 = vrot.lane.b32.xlu0 %v296_v2, %s423_s1  ;;  %336 = vmatpush3.bf16.msra.mxu0 %v382_v6  ;;  %v390_v12 = vld [vmem:[%s562_s4] sm:$0xff]  }
   0x5   :  { %v28_v7 = vand.u32 2147450879, %v27_v3  ;;  %v298_v8 = vcombine.low %v29_v4, %v29_v4  ;;  %337 = vmatprep.subr.bf16.mxu0 %v422_v5  ;;  %356 = vmatpush3.bf16.msra.mxu1 %v390_v12  ;;  %v386_v15 = vld [vmem:[%s560_s2 + $0x20] sm:$0xff]  }
   0x6   :  { %357 = vmatprep.subr.bf16.mxu1 %v422_v5 }
   0x7   :  { %v297_v10 = vcombine.low %v28_v7, %v28_v7  ;;  %43 = vrot.lane.b32.xlu1 %v298_v8, %s424_s28 }
   0x8   :  { %338 = vmatpush3.bf16.msra.mxu0 %v383_v9 }
   0x9   :  { %38 = vrot.lane.b32.xlu0 %v297_v10, %s425_s29  ;;  %339 = vmatprep.subr.bf16.mxu0 %v422_v5 }
   0xa   :  { %358 = vmatpush3.bf16.msra.mxu1 %v391_v14 }
   0xb   :  { %359 = vmatprep.subr.bf16.mxu1 %v422_v5 }
   0xc   :  { %340 = vmatpush3.bf16.msra.mxu0 %v384_v11 }
   0xd   :  { %341 = vmatprep.subr.bf16.mxu0 %v422_v5 }
  0x10   :  { %342 = vmatpush3.bf16.msra.mxu0 %v385_v13 }
  0x11   :  { %343 = vmatprep.subr.bf16.mxu0 %v422_v5 }
  0x12   :  { %11 = vsyncpa [#allocation3], 0  ;;  %v387_v17 = vld [vmem:[%s560_s2 + $0x28] sm:$0xff]   ;;  %360 = vmatpush3.bf16.msra.mxu1 %v392_v16  ;;  %v393_v18 = vld [vmem:[%s562_s4 + $0x18] sm:$0xff]   ;;  %vm45_vm1 = vcmask 261120   ;;  %vm49_vm2 = vcmask 523264  }
  0x13   :  { %361 = vmatprep.subr.bf16.mxu1 %v422_v5  ;;  %v388_v19 = vld [vmem:[%s560_s2 + $0x30] sm:$0xff]   ;;  %v394_v20 = vld [vmem:[%s562_s4 + $0x20] sm:$0xff]   ;;  %v389_v21 = vld [vmem:[%s560_s2 + $0x38] sm:$0xff]   ;;  %vm52_vm3 = vcmask 785408   ;;  %s427_s11 = smov [#allocation2]   ;;  %vm280_vm4 = vcmask 130048  }
  0x14   :  { %344 = vmatpush3.bf16.msra.mxu0 %v386_v15  ;;  %v395_v22 = vld [vmem:[%s562_s4 + $0x28] sm:$0xff]   ;;  %v396_v29 = vld [vmem:[%s562_s4 + $0x30] sm:$0xff]   ;;  %v397_v30 = vld [vmem:[%s562_s4 + $0x38] sm:$0xff]   ;;  %s288_s12 = sshll.u32 %s427_s11, 4  ;;  %s289_s12 = int_to_ptr.vmem [resolvable:$true] %s288_s12 }
  0x15   :  { %345 = vmatprep.subr.bf16.mxu0 %v422_v5  ;;  %v299_v31 = vld [vmem:[%s561_s3] ss:$0 sm:$0xff]  ;;  %s398_s3 = scalar_lea.vmem %s289_s12, 128  ;;  %p403_p1 = scmp.lt.s32.totalorder %s289_s12, %s289_s12 }
  0x16   :  { %362 = vmatpush3.bf16.msra.mxu1 %v393_v18  ;;  %v308_v39 = vld [vmem:[%s563_s5] ss:$0 sm:$0xff]  ;;  %p399_p0 = scmp.ne.s32.totalorder %s289_s12, %s398_s3  ;;  %p404_p2 = scmp.lt.s32.totalorder %s398_s3, %s398_s3 }
  0x17   :  { %363 = vmatprep.subr.bf16.mxu1 %v422_v5 }
  0x18   :  { %346 = vmatpush3.bf16.msra.mxu0 %v387_v17  ;;  %p405_p3 = por %p404_p2, %p403_p1 }
  0x19   :  { %347 = vmatprep.subr.bf16.mxu0 %v422_v5 }
  0x1a   :  { %364 = vmatpush3.bf16.msra.mxu1 %v394_v20  ;;  %p406_p4 = pnand %p405_p3, %p399_p0 }
  0x1b   :  { %365 = vmatprep.subr.bf16.mxu1 %v422_v5 }
  0x1c   :  { %348 = vmatpush3.bf16.msra.mxu0 %v388_v19 }
  0x1d   :  { %349 = vmatprep.subr.bf16.mxu0 %v422_v5 }
  0x1e   :  { %366 = vmatpush3.bf16.msra.mxu1 %v395_v22 }
  0x1f   :  { %367 = vmatprep.subr.bf16.mxu1 %v422_v5 }
  0x20   :  { %350 = vmatpush3.bf16.msra.mxu0 %v389_v21 }
  0x22   :  { %368 = vmatpush3.bf16.msra.mxu1 %v396_v29 }
  0x23   :  { %369 = vmatprep.subr.bf16.mxu1 %v422_v5 }
  0x26   :  { %370 = vmatpush3.bf16.msra.mxu1 %v397_v30 }
  0x76   :  { %v34_v23 = vpop.permute.xlu0 %33 }
  0x77   :  { %v48_v25 = vsel %vm45_vm1, %v469_v1, %v34_v23 }
  0x79   :  { %v44_v24 = vpop.permute.xlu1 %43 }
  0x7b   :  { %v39_v26 = vpop.permute.xlu0 %38 }
  0x7c   :  { %v51_v27 = vsel %vm49_vm2, %v48_v25, %v39_v26 }
  0x7d   :  { %v54_v28 = vsel %vm52_vm3, %v51_v27, %v44_v24 }
  0x7e   :  { %352 = vmatmul.mubr.bf16.vlgmr.msra.gmra.mrb[0].mxu0 %v54_v28 }
 0x151   :  { %v161_v32 = vpop.f32.mrb[0].mxu0 }
 0x152   :  { %v162_v33 = vadd.f32 %v299_v31, %v161_v32  ;;  %v353_v34 = vpop.f32.mrb[1].mxu0 }
 0x153   :  { %v164_v35 = vpop.f32.mrb[2].mxu0 }
 0x154   :  { %v167_v36 = vmax.f32 %v162_v33, 0.0  ;;  %v354_v37 = vpop.f32.mrb[3].mxu0 }
 0x156   :  { %v168_v38 = vpack.c.bf16 %v167_v36, %v167_v36 }
 0x158   :  { %372 = vmatmul.mubr.bf16.vlgmr.msra.gmra.mrb[0].mxu1 %v168_v38 }
 0x22b   :  { %v274_v40 = vpop.f32.mrb[0].mxu1 }
 0x22c   :  { %v275_v41 = vadd.f32 %v308_v39, %v274_v40  ;;  %v373_v42 = vpop.f32.mrb[1].mxu1 }
 0x22d   :  { %v277_v43 = vpop.f32.mrb[2].mxu1 }
 0x22e   :  { %v374_v44 = vpop.f32.mrb[3].mxu1  ;;  %281 = vst.msk [vmem:[#allocation2] sm:$0xff] %vm280_vm4, %v275_v41 }
 0x22f   :  { %409 = shalt.err (!%p406_p4)
}
 0x230   :  { %s410_s5 = scalar_lea.hbm %s564_s6, 128 }
 0x231   :  { %p411_p5 = scmp.ne.s32.totalorder %s564_s6, %s410_s5  ;;  %p414_p6 = scmp.lt.u32.totalorder %s410_s5, %s564_s6 }
 0x233   :  { %p416_p7 = pnand %p414_p6, %p411_p5 }
 0x235   :  { %419 = shalt.err (!%p416_p7)
}
 0x236   :  { %291 = dma.vmem_to_hbm [thread:$0]  %s289_s12, 128, %s564_s6, [#allocation3]  }
 0x237   :  { %420 = dma.done.wait [#allocation3], 128  }
 0x238   :  { %421 = vsyncadd [#allocation3], 4294967168 }
 0x239   :  { %295 = vsyncpa [#allocation3], 1 }

</bundles_post_ra>
